<compile_context>
chip_gen: v7x
topology: tpu7x:2x2x1
jax: 0.10.0
libtpu: 0.0.40
codegen_flags: <defaults>
</compile_context>

<pallas_src>
import math
import functools

import jax
import jax.numpy as jnp
from jax import lax
from jax.experimental import pallas as pl
from jax.experimental.pallas import tpu as pltpu


EDGES = 64
FILTERS = 128


# ----------------------------------------------------------------------------
# Fused kernel: one grid step per modality; whole batch folded into M.
# ----------------------------------------------------------------------------
def hypergcn_fused_kernel(x_ref, wp_ref, pe_ref, wx_ref, bx_ref, we_ref, be_ref,
                          o_ref, *, batch, seq, filters):
    # --- projection + positional embedding (proj bias folded into pe; dropout p=0 -> id)
    xb = x_ref[0].astype(jnp.bfloat16)                                   # (B*S, Din)
    proj = jnp.dot(xb, wp_ref[0],
                   preferred_element_type=jnp.float32) + pe_ref[0]       # (B*S, Dm) f32

    # --- fused (Wf | Wt) matmul: a single pass of the projected features through the MXU
    xc = jnp.dot(proj.astype(jnp.bfloat16), wx_ref[0],
                 preferred_element_type=jnp.float32) + bx_ref[0]         # (B*S, F+Dm)
    h1 = jnp.maximum(xc[:, :filters], 0.0)                               # (B*S, F)
    xt = xc[:, filters:]                                                 # (B*S, Dm)

    # --- dynamic incidence matrix
    logits = jnp.dot(h1.astype(jnp.bfloat16), we_ref[0],
                     preferred_element_type=jnp.float32) + be_ref[0]     # (B*S, E)
    H = jax.nn.sigmoid(logits)                                           # f32

    # node degree (per row, batch-independent) -> EUP reciprocal
    dv_inv = pl.reciprocal(jnp.sum(H, axis=1, keepdims=True) + 1e-6, approx=True)

    Hb = H.astype(jnp.bfloat16)
    xtb = xt.astype(jnp.bfloat16)

    outs = []
    for b in range(batch):                       # static unrolled loop (B is tiny)
        sl = slice(b * seq, (b + 1) * seq)
        Hf = H[sl]                                                       # (S, E) f32
        # edge degree per batch element
        de_inv = pl.reciprocal(jnp.sum(Hf, axis=0, keepdims=True) + 1e-6,
                               approx=True)                              # (1, E)
        # edge messages: H^T @ Xt, contraction over S without materializing H.T
        edge = lax.dot_general(Hb[sl], xtb[sl],
                               (((0,), (0,)), ((), ())),
                               preferred_element_type=jnp.float32)       # (E, Dm)
        # fold D_e^-1 into H's columns (lane-wise broadcast, no transpose needed)
        Hn = (Hf * de_inv).astype(jnp.bfloat16)                          # (S, E)
        node = jnp.dot(Hn, edge.astype(jnp.bfloat16),
                       preferred_element_type=jnp.float32)               # (S, Dm)
        outs.append(node * dv_inv[sl])                                   # D_v^-1 scaling
    o_ref[0] = jnp.concatenate(outs, axis=0).astype(o_ref.dtype)


def fused_hypergcn(x_all, wp, pe, wx, bx, we, be, *, batch, seq):
    """x_all: (3, B*S, Din_max) -> (3, B*S, Dm_max)."""
    M, BS, Din = x_all.shape
    Dm = wp.shape[-1]
    FDm = wx.shape[-1]
    F_ = we.shape[1]
    E = we.shape[-1]
    kernel = functools.partial(hypergcn_fused_kernel,
                               batch=batch, seq=seq, filters=F_)
    return pl.pallas_call(
        kernel,
        out_shape=jax.ShapeDtypeStruct((M, BS, Dm), jnp.float32),
        grid=(M,),
        in_specs=[
            pl.BlockSpec((1, BS, Din), lambda m: (m, 0, 0)),   # x (folded batch)
            pl.BlockSpec((1, Din, Dm), lambda m: (m, 0, 0)),   # proj weight (bf16)
            pl.BlockSpec((1, BS, Dm), lambda m: (m, 0, 0)),    # pe (+proj bias), tiled
            pl.BlockSpec((1, Dm, FDm), lambda m: (m, 0, 0)),   # [Wf | Wt] (bf16)
            pl.BlockSpec((1, 1, FDm), lambda m: (m, 0, 0)),    # [bf | bt]
            pl.BlockSpec((1, F_, E), lambda m: (m, 0, 0)),     # We (bf16)
            pl.BlockSpec((1, 1, E), lambda m: (m, 0, 0)),      # be
        ],
        out_specs=pl.BlockSpec((1, BS, Dm), lambda m: (m, 0, 0)),
        compiler_params=pltpu.CompilerParams(dimension_semantics=("parallel",)),
    )(x_all, wp, pe, wx, bx, we, be)


# ----------------------------------------------------------------------------
# Parameter construction (deterministic, in-script) + padding/packing
# ----------------------------------------------------------------------------
def sinusoidal_pe(max_seq_len, d_model):
    position = jnp.arange(max_seq_len, dtype=jnp.float32)[:, None]
    div_term = jnp.exp(
        jnp.arange(0, d_model, 2, dtype=jnp.float32) * (-math.log(10000.0) / d_model)
    )
    pe = jnp.zeros((max_seq_len, d_model), dtype=jnp.float32)
    pe = pe.at[:, 0::2].set(jnp.sin(position * div_term))
    pe = pe.at[:, 1::2].set(jnp.cos(position * div_term))  # d_model even here
    return pe


def init_linear(key, din, dout):
    kw, kb = jax.random.split(key)
    bound = 1.0 / math.sqrt(din)
    w = jax.random.uniform(kw, (din, dout), jnp.float32, -bound, bound)
    b = jax.random.uniform(kb, (1, dout), jnp.float32, -bound, bound)
    return w, b


def init_hgconv(key, cin, cout, edges=EDGES, filters=FILTERS):
    k1, k2, k3 = jax.random.split(key, 3)
    wf, bf = init_linear(k1, cin, filters)
    we, be = init_linear(k2, filters, edges)
    wt, bt = init_linear(k3, cin, cout)
    return (wf, bf, we, be, wt, bt)


def pack_hypergcn_params(key, orig_dims, fus_dims, seq,
                         edges=EDGES, filters=FILTERS, max_seq_len=1024):
    """Zero-pad all per-modality weights to common shapes and stack over modality."""
    Din = max(orig_dims)
    Dm = max(fus_dims)
    keys = jax.random.split(key, 2 * len(orig_dims))
    wp_l, pe_l, wx_l, bx_l, we_l, be_l = [], [], [], [], [], []
    for i, (din, dfus) in enumerate(zip(orig_dims, fus_dims)):
        wp, bp = init_linear(keys[2 * i], din, dfus)
        wf, bf, we, be, wt, bt = init_hgconv(keys[2 * i + 1], dfus, dfus, edges, filters)

        wp_p = jnp.zeros((Din, Dm), jnp.float32).at[:din, :dfus].set(wp)
        bp_p = jnp.zeros((1, Dm), jnp.float32).at[:, :dfus].set(bp)
        pe = sinusoidal_pe(max_seq_len, dfus)[:seq]                       # (S, dfus)
        pe_p = jnp.zeros((seq, Dm), jnp.float32).at[:, :dfus].set(pe)
        pe_eff = pe_p + bp_p                                              # fold proj bias

        wf_p = jnp.zeros((Dm, filters), jnp.float32).at[:dfus, :].set(wf)
        wt_p = jnp.zeros((Dm, Dm), jnp.float32).at[:dfus, :dfus].set(wt)
        bt_p = jnp.zeros((1, Dm), jnp.float32).at[:, :dfus].set(bt)

        wp_l.append(wp_p)
        pe_l.append(pe_eff)
        wx_l.append(jnp.concatenate([wf_p, wt_p], axis=1))                # (Dm, F+Dm)
        bx_l.append(jnp.concatenate([bf, bt_p], axis=1))                  # (1, F+Dm)
        we_l.append(we)
        be_l.append(be)

    return {
        "wp": jnp.stack(wp_l).astype(jnp.bfloat16),   # (3, Din, Dm)
        "pe": jnp.stack(pe_l),                        # (3, S, Dm)  f32
        "wx": jnp.stack(wx_l).astype(jnp.bfloat16),   # (3, Dm, F+Dm)
        "bx": jnp.stack(bx_l),                        # (3, 1, F+Dm) f32
        "we": jnp.stack(we_l).astype(jnp.bfloat16),   # (3, F, E)
        "be": jnp.stack(be_l),                        # (3, 1, E) f32
    }


# ----------------------------------------------------------------------------
# HyperGCN forward
# ----------------------------------------------------------------------------
def _pad_fold(x, din_max):
    b, s, d = x.shape
    x = jnp.pad(x, ((0, 0), (0, 0), (0, din_max - d)))
    return x.reshape(b * s, din_max)


@functools.partial(jax.jit, static_argnames=("fus_dims",))
def hypergcn_forward(text_x, audio_x, video_x, packed, *, fus_dims):
    # TODO(synk): self.text_model(text_x) (BERT) stubbed: text_x is already features.
    B, S, _ = text_x.shape
    Din = packed["wp"].shape[1]
    x_all = jnp.stack([_pad_fold(text_x, Din),
                       _pad_fold(audio_x, Din),
                       _pad_fold(video_x, Din)], axis=0)          # (3, B*S, Din)
    pe_all = jnp.tile(packed["pe"], (1, B, 1))                    # (3, B*S, Dm)

    out = fused_hypergcn(x_all, packed["wp"], pe_all, packed["wx"],
                         packed["bx"], packed["we"], packed["be"],
                         batch=B, seq=S)                          # (3, B*S, Dm)

    Dm = out.shape[-1]
    results = []
    for i, d in enumerate(fus_dims):
        o = out[i].reshape(B, S, Dm)[:, :, :d]                    # strip padding
        results.append(jnp.transpose(o, (0, 2, 1)))               # (B, d, S) == squeeze()
    return tuple(results)                                         # (out_l, out_a, out_v)


if __name__ == "__main__":
    # small, module-consistent shapes
    B, S = 2, 8
    orig_dims = (24, 20, 16)     # args.feature_dims (l, a, v)
    fus_dims = (32, 16, 24)      # args.fus_d_{l,a,v}

    key = jax.random.PRNGKey(0)
    kp, kl, ka, kv = jax.random.split(key, 4)

    packed = pack_hypergcn_params(kp, orig_dims, fus_dims, seq=S)

    text_x = jax.random.normal(kl, (B, S, orig_dims[0]), jnp.float32)
    audio_x = jax.random.normal(ka, (B, S, orig_dims[1]), jnp.float32)
    video_x = jax.random.normal(kv, (B, S, orig_dims[2]), jnp.float32)

    out_l, out_a, out_v = hypergcn_forward(text_x, audio_x, video_x, packed,
                                           fus_dims=fus_dims)
    jax.block_until_ready((out_l, out_a, out_v))

    assert out_l.shape == (B, fus_dims[0], S)
    assert out_a.shape == (B, fus_dims[1], S)
    assert out_v.shape == (B, fus_dims[2], S)
    assert all(bool(jnp.all(jnp.isfinite(o))) for o in (out_l, out_a, out_v))
    print("KERNEL_OK")
</pallas_src>

<mosaic_0001>
module attributes {stable_mosaic.version = 11 : i64} {
  func.func @hypergcn_fused_kernel(%arg0: i32, %arg1: memref<1x16x24xf32, #tpu.memory_space<vmem>>, %arg2: memref<1x24x32xbf16, #tpu.memory_space<vmem>>, %arg3: memref<1x16x32xf32, #tpu.memory_space<vmem>>, %arg4: memref<1x32x160xbf16, #tpu.memory_space<vmem>>, %arg5: memref<1x1x160xf32, #tpu.memory_space<vmem>>, %arg6: memref<1x128x64xbf16, #tpu.memory_space<vmem>>, %arg7: memref<1x1x64xf32, #tpu.memory_space<vmem>>, %arg8: memref<1x16x32xf32, #tpu.memory_space<vmem>>) attributes {dimension_semantics = [#tpu.dimension_semantics<parallel>], iteration_bounds = array<i64: 3>, scalar_prefetch = 0 : i64, scratch_operands = 0 : i64, tpu.core_type = #tpu.core_type<tc>, window_params = [{transform_indices = @transform_0, window_bounds = array<i64: 1, 16, 24>}, {transform_indices = @transform_1, window_bounds = array<i64: 1, 24, 32>}, {transform_indices = @transform_2, window_bounds = array<i64: 1, 16, 32>}, {transform_indices = @transform_3, window_bounds = array<i64: 1, 32, 160>}, {transform_indices = @transform_4, window_bounds = array<i64: 1, 1, 160>}, {transform_indices = @transform_5, window_bounds = array<i64: 1, 128, 64>}, {transform_indices = @transform_6, window_bounds = array<i64: 1, 1, 64>}, {transform_indices = @transform_7, window_bounds = array<i64: 1, 16, 32>}]} {
    %c0 = arith.constant 0 : index
    %c0_0 = arith.constant 0 : index
    %c0_1 = arith.constant 0 : index
    %0 = vector.load %arg1[%c0, %c0_0, %c0_1] : memref<1x16x24xf32, #tpu.memory_space<vmem>>, vector<1x16x24xf32>
    %1 = vector.shape_cast %0 : vector<1x16x24xf32> to vector<16x24xf32>
    %2 = arith.truncf %1 : vector<16x24xf32> to vector<16x24xbf16>
    %c0_2 = arith.constant 0 : index
    %c0_3 = arith.constant 0 : index
    %c0_4 = arith.constant 0 : index
    %3 = vector.load %arg2[%c0_2, %c0_3, %c0_4] : memref<1x24x32xbf16, #tpu.memory_space<vmem>>, vector<1x24x32xbf16>
    %4 = vector.shape_cast %3 : vector<1x24x32xbf16> to vector<24x32xbf16>
    %cst = arith.constant dense<0.000000e+00> : vector<16x32xf32>
    %5 = tpu.matmul %2, %4, %cst {dimension_numbers = #tpu.dot_dimension_numbers<[1], [0], [0], [1], [0, 0, 1, 1], [], []>} : vector<16x24xbf16>, vector<24x32xbf16>, vector<16x32xf32> -> vector<16x32xf32>
    %c0_5 = arith.constant 0 : index
    %c0_6 = arith.constant 0 : index
    %c0_7 = arith.constant 0 : index
    %6 = vector.load %arg3[%c0_5, %c0_6, %c0_7] : memref<1x16x32xf32, #tpu.memory_space<vmem>>, vector<1x16x32xf32>
    %7 = vector.shape_cast %6 : vector<1x16x32xf32> to vector<16x32xf32>
    %8 = arith.addf %5, %7 : vector<16x32xf32>
    %9 = arith.truncf %8 : vector<16x32xf32> to vector<16x32xbf16>
    %c0_8 = arith.constant 0 : index
    %c0_9 = arith.constant 0 : index
    %c0_10 = arith.constant 0 : index
    %10 = vector.load %arg4[%c0_8, %c0_9, %c0_10] : memref<1x32x160xbf16, #tpu.memory_space<vmem>>, vector<1x32x160xbf16>
    %11 = vector.shape_cast %10 : vector<1x32x160xbf16> to vector<32x160xbf16>
    %cst_11 = arith.constant dense<0.000000e+00> : vector<16x160xf32>
    %12 = tpu.matmul %9, %11, %cst_11 {dimension_numbers = #tpu.dot_dimension_numbers<[1], [0], [0], [1], [0, 0, 1, 1], [], []>} : vector<16x32xbf16>, vector<32x160xbf16>, vector<16x160xf32> -> vector<16x160xf32>
    %c0_12 = arith.constant 0 : index
    %c0_13 = arith.constant 0 : index
    %c0_14 = arith.constant 0 : index
    %13 = vector.load %arg5[%c0_12, %c0_13, %c0_14] : memref<1x1x160xf32, #tpu.memory_space<vmem>>, vector<1x1x160xf32>
    %14 = vector.shape_cast %13 : vector<1x1x160xf32> to vector<1x160xf32>
    %15 = vector.broadcast %14 : vector<1x160xf32> to vector<16x160xf32>
    %16 = arith.addf %12, %15 : vector<16x160xf32>
    %17 = vector.extract_strided_slice %16 {offsets = [0, 0], sizes = [16, 128], strides = [1, 1]} : vector<16x160xf32> to vector<16x128xf32>
    %cst_15 = arith.constant 0.000000e+00 : f32
    %18 = vector.broadcast %cst_15 : f32 to vector<16x128xf32>
    %19 = arith.maximumf %17, %18 : vector<16x128xf32>
    %20 = vector.extract_strided_slice %16 {offsets = [0, 128], sizes = [16, 32], strides = [1, 1]} : vector<16x160xf32> to vector<16x32xf32>
    %21 = arith.truncf %19 : vector<16x128xf32> to vector<16x128xbf16>
    %c0_16 = arith.constant 0 : index
    %c0_17 = arith.constant 0 : index
    %c0_18 = arith.constant 0 : index
    %22 = vector.load %arg6[%c0_16, %c0_17, %c0_18] : memref<1x128x64xbf16, #tpu.memory_space<vmem>>, vector<1x128x64xbf16>
    %23 = vector.shape_cast %22 : vector<1x128x64xbf16> to vector<128x64xbf16>
    %cst_19 = arith.constant dense<0.000000e+00> : vector<16x64xf32>
    %24 = tpu.matmul %21, %23, %cst_19 {dimension_numbers = #tpu.dot_dimension_numbers<[1], [0], [0], [1], [0, 0, 1, 1], [], []>} : vector<16x128xbf16>, vector<128x64xbf16>, vector<16x64xf32> -> vector<16x64xf32>
    %c0_20 = arith.constant 0 : index
    %c0_21 = arith.constant 0 : index
    %c0_22 = arith.constant 0 : index
    %25 = vector.load %arg7[%c0_20, %c0_21, %c0_22] : memref<1x1x64xf32, #tpu.memory_space<vmem>>, vector<1x1x64xf32>
    %26 = vector.shape_cast %25 : vector<1x1x64xf32> to vector<1x64xf32>
    %27 = vector.broadcast %26 : vector<1x64xf32> to vector<16x64xf32>
    %28 = arith.addf %24, %27 : vector<16x64xf32>
    %29 = arith.negf %28 : vector<16x64xf32>
    %30 = math.exp %29 : vector<16x64xf32>
    %cst_23 = arith.constant 1.000000e+00 : f32
    %31 = vector.broadcast %cst_23 : f32 to vector<16x64xf32>
    %32 = arith.addf %31, %30 : vector<16x64xf32>
    %33 = arith.divf %31, %32 : vector<16x64xf32>
    %cst_24 = arith.constant dense<0.000000e+00> : vector<16xf32>
    %34 = vector.multi_reduction <add>, %33, %cst_24 [1] : vector<16x64xf32> to vector<16xf32>
    %35 = vector.shape_cast %34 : vector<16xf32> to vector<16x1xf32>
    %cst_25 = arith.constant 9.99999997E-7 : f32
    %36 = vector.broadcast %cst_25 : f32 to vector<16x1xf32>
    %37 = arith.addf %35, %36 : vector<16x1xf32>
    %38 = tpu.reciprocal %37 {approx = true} : vector<16x1xf32> -> vector<16x1xf32>
    %39 = arith.truncf %33 : vector<16x64xf32> to vector<16x64xbf16>
    %40 = arith.truncf %20 : vector<16x32xf32> to vector<16x32xbf16>
    %41 = vector.extract_strided_slice %33 {offsets = [0, 0], sizes = [8, 64], strides = [1, 1]} : vector<16x64xf32> to vector<8x64xf32>
    %cst_26 = arith.constant dense<0.000000e+00> : vector<64xf32>
    %42 = vector.multi_reduction <add>, %41, %cst_26 [0] : vector<8x64xf32> to vector<64xf32>
    %43 = vector.shape_cast %42 : vector<64xf32> to vector<1x64xf32>
    %cst_27 = arith.constant 9.99999997E-7 : f32
    %44 = vector.broadcast %cst_27 : f32 to vector<1x64xf32>
    %45 = arith.addf %43, %44 : vector<1x64xf32>
    %46 = tpu.reciprocal %45 {approx = true} : vector<1x64xf32> -> vector<1x64xf32>
    %47 = vector.extract_strided_slice %39 {offsets = [0, 0], sizes = [8, 64], strides = [1, 1]} : vector<16x64xbf16> to vector<8x64xbf16>
    %48 = vector.extract_strided_slice %40 {offsets = [0, 0], sizes = [8, 32], strides = [1, 1]} : vector<16x32xbf16> to vector<8x32xbf16>
    %cst_28 = arith.constant dense<0.000000e+00> : vector<64x32xf32>
    %49 = tpu.matmul %47, %48, %cst_28 {dimension_numbers = #tpu.dot_dimension_numbers<[0], [0], [1], [1], [0, 1, 1, 1], [], []>} : vector<8x64xbf16>, vector<8x32xbf16>, vector<64x32xf32> -> vector<64x32xf32>
    %50 = vector.broadcast %46 : vector<1x64xf32> to vector<8x64xf32>
    %51 = arith.mulf %41, %50 : vector<8x64xf32>
    %52 = arith.truncf %51 : vector<8x64xf32> to vector<8x64xbf16>
    %53 = arith.truncf %49 : vector<64x32xf32> to vector<64x32xbf16>
    %cst_29 = arith.constant dense<0.000000e+00> : vector<8x32xf32>
    %54 = tpu.matmul %52, %53, %cst_29 {dimension_numbers = #tpu.dot_dimension_numbers<[1], [0], [0], [1], [0, 0, 1, 1], [], []>} : vector<8x64xbf16>, vector<64x32xbf16>, vector<8x32xf32> -> vector<8x32xf32>
    %55 = vector.extract_strided_slice %38 {offsets = [0, 0], sizes = [8, 1], strides = [1, 1]} : vector<16x1xf32> to vector<8x1xf32>
    %56 = vector.broadcast %55 : vector<8x1xf32> to vector<8x32xf32>
    %57 = arith.mulf %54, %56 : vector<8x32xf32>
    %58 = vector.extract_strided_slice %33 {offsets = [8, 0], sizes = [8, 64], strides = [1, 1]} : vector<16x64xf32> to vector<8x64xf32>
    %cst_30 = arith.constant dense<0.000000e+00> : vector<64xf32>
    %59 = vector.multi_reduction <add>, %58, %cst_30 [0] : vector<8x64xf32> to vector<64xf32>
    %60 = vector.shape_cast %59 : vector<64xf32> to vector<1x64xf32>
    %cst_31 = arith.constant 9.99999997E-7 : f32
    %61 = vector.broadcast %cst_31 : f32 to vector<1x64xf32>
    %62 = arith.addf %60, %61 : vector<1x64xf32>
    %63 = tpu.reciprocal %62 {approx = true} : vector<1x64xf32> -> vector<1x64xf32>
    %64 = vector.extract_strided_slice %39 {offsets = [8, 0], sizes = [8, 64], strides = [1, 1]} : vector<16x64xbf16> to vector<8x64xbf16>
    %65 = vector.extract_strided_slice %40 {offsets = [8, 0], sizes = [8, 32], strides = [1, 1]} : vector<16x32xbf16> to vector<8x32xbf16>
    %cst_32 = arith.constant dense<0.000000e+00> : vector<64x32xf32>
    %66 = tpu.matmul %64, %65, %cst_32 {dimension_numbers = #tpu.dot_dimension_numbers<[0], [0], [1], [1], [0, 1, 1, 1], [], []>} : vector<8x64xbf16>, vector<8x32xbf16>, vector<64x32xf32> -> vector<64x32xf32>
    %67 = vector.broadcast %63 : vector<1x64xf32> to vector<8x64xf32>
    %68 = arith.mulf %58, %67 : vector<8x64xf32>
    %69 = arith.truncf %68 : vector<8x64xf32> to vector<8x64xbf16>
    %70 = arith.truncf %66 : vector<64x32xf32> to vector<64x32xbf16>
    %cst_33 = arith.constant dense<0.000000e+00> : vector<8x32xf32>
    %71 = tpu.matmul %69, %70, %cst_33 {dimension_numbers = #tpu.dot_dimension_numbers<[1], [0], [0], [1], [0, 0, 1, 1], [], []>} : vector<8x64xbf16>, vector<64x32xbf16>, vector<8x32xf32> -> vector<8x32xf32>
    %72 = vector.extract_strided_slice %38 {offsets = [8, 0], sizes = [8, 1], strides = [1, 1]} : vector<16x1xf32> to vector<8x1xf32>
    %73 = vector.broadcast %72 : vector<8x1xf32> to vector<8x32xf32>
    %74 = arith.mulf %71, %73 : vector<8x32xf32>
    %75 = tpu.concatenate %57, %74 in 0 : vector<8x32xf32>, vector<8x32xf32> -> vector<16x32xf32>
    %c0_34 = arith.constant 0 : index
    %c0_35 = arith.constant 0 : index
    %c0_36 = arith.constant 0 : index
    %76 = vector.load %arg8[%c0_34, %c0_35, %c0_36] : memref<1x16x32xf32, #tpu.memory_space<vmem>>, vector<1x16x32xf32>
    %77 = vector.shape_cast %76 : vector<1x16x32xf32> to vector<16x32xf32>
    %78 = vector.shape_cast %75 : vector<16x32xf32> to vector<1x16x32xf32>
    tpu.vector_store %arg8[%c0_34, %c0_35, %c0_36], %78 {strides = array<i32>} : memref<1x16x32xf32, #tpu.memory_space<vmem>>, vector<1x16x32xf32>,
    return
  }
  func.func @transform_0(%arg0: i32) -> (i32, i32, i32) {
    %c0_i32 = arith.constant 0 : i32
    %c0_i32_0 = arith.constant 0 : i32
    %c0_i32_1 = arith.constant 0 : i32
    return %arg0, %c0_i32, %c0_i32_0 : i32, i32, i32
  }
  func.func @transform_1(%arg0: i32) -> (i32, i32, i32) {
    %c0_i32 = arith.constant 0 : i32
    %c0_i32_0 = arith.constant 0 : i32
    %c0_i32_1 = arith.constant 0 : i32
    return %arg0, %c0_i32, %c0_i32_0 : i32, i32, i32
  }
  func.func @transform_2(%arg0: i32) -> (i32, i32, i32) {
    %c0_i32 = arith.constant 0 : i32
    %c0_i32_0 = arith.constant 0 : i32
    %c0_i32_1 = arith.constant 0 : i32
    return %arg0, %c0_i32, %c0_i32_0 : i32, i32, i32
  }
  func.func @transform_3(%arg0: i32) -> (i32, i32, i32) {
    %c0_i32 = arith.constant 0 : i32
    %c0_i32_0 = arith.constant 0 : i32
    %c0_i32_1 = arith.constant 0 : i32
    return %arg0, %c0_i32, %c0_i32_0 : i32, i32, i32
  }
  func.func @transform_4(%arg0: i32) -> (i32, i32, i32) {
    %c0_i32 = arith.constant 0 : i32
    %c0_i32_0 = arith.constant 0 : i32
    %c0_i32_1 = arith.constant 0 : i32
    return %arg0, %c0_i32, %c0_i32_0 : i32, i32, i32
  }
  func.func @transform_5(%arg0: i32) -> (i32, i32, i32) {
    %c0_i32 = arith.constant 0 : i32
    %c0_i32_0 = arith.constant 0 : i32
    %c0_i32_1 = arith.constant 0 : i32
    return %arg0, %c0_i32, %c0_i32_0 : i32, i32, i32
  }
  func.func @transform_6(%arg0: i32) -> (i32, i32, i32) {
    %c0_i32 = arith.constant 0 : i32
    %c0_i32_0 = arith.constant 0 : i32
    %c0_i32_1 = arith.constant 0 : i32
    return %arg0, %c0_i32, %c0_i32_0 : i32, i32, i32
  }
  func.func @transform_7(%arg0: i32) -> (i32, i32, i32) {
    %c0_i32 = arith.constant 0 : i32
    %c0_i32_0 = arith.constant 0 : i32
    %c0_i32_1 = arith.constant 0 : i32
    return %arg0, %c0_i32, %c0_i32_0 : i32, i32, i32
  }
}

</mosaic_0001>

<bundles_post_ra>
// kernel: hypergcn_forward.1
= control target key start
LH: loop header
LB: loop body
LE: loop exit
PB: predicated region body
PF: predicated region fallthrough
CT: control target
= control target key end

     0   :  { %s1375_s24 = smov 0   ;;  %s1492_s0 = inlined_call_operand.vmem [shape: f32[3,16,24], index: 0, kind: input, shape index: {}]   ;;  %s1493_s1 = inlined_call_operand.vmem [shape: bf16[3,24,32], index: 1, kind: input, shape index: {}]   ;;  %s1494_s2 = inlined_call_operand.vmem [shape: f32[3,16,32], index: 2, kind: input, shape index: {}]   ;;  %s1495_s3 = inlined_call_operand.vmem [shape: bf16[3,32,160], index: 3, kind: input, shape index: {}]   ;;  %s1496_s4 = inlined_call_operand.vmem [shape: f32[3,1,160], index: 4, kind: input, shape index: {}]   ;;  %s1497_s5 = inlined_call_operand.vmem [shape: bf16[3,128,64], index: 5, kind: input, shape index: {}]   ;;  %s1498_s6 = inlined_call_operand.vmem [shape: f32[3,1,64], index: 6, kind: input, shape index: {}]   ;;  %s1499_s7 = inlined_call_operand.vmem [shape: f32[3,16,32], index: 7, kind: output, shape index: {}]  }
   0x1 LB: > { %s1121_s25 = sadd.s32 4294967295, %s1330_s24   ;;  %p1125_p0 = scmp.ge.s32.totalorder %s1330_s24, 1  ;;  %s1330_s24 = sphi %s1375_s24, %s17_s24  }
   0x2   : > { %p294_p1 = scmp.lt.s32.totalorder %s1330_s24, 4 }
   0x4   : > { %p295_p2 = pnand %p1125_p0, %p294_p1 }
   0x5   : > { %p353_p3 = scmp.lt.s32.totalorder (!%p295_p2), %s1121_s25, 2  ;;  %v1332_v0 = vmov (!%p295_p2), 0.0   ;;  %vm1333_vm0 = vmmov (!%p295_p2), 0   ;;  %vm412_vm1 = vcmask (!%p295_p2), 1043456   ;;  %vm408_vm2 = vcmask (!%p295_p2), 195584  }
   0x6   : > { %298 = sbr.rel (%p295_p2) target bundleno = 1501 (0x5dd), region = 48  ;;  %1206 = vmatprep.subr.bf16.mxu0 (!%p295_p2), %v1332_v0  ;;  %1210 = vmatprep.mubr.msk.bf16.mxu0 (!%p295_p2), %vm1333_vm0, %v1332_v0  ;;  %v1334_v11 = vmov (!%p295_p2), 0   ;;  %vm494_vm3 = vcmask (!%p295_p2), 261120   ;;  %v464_v29 = vlaneseq (!%p295_p2)  ;;  %vm668_vm4 = vcmask (!%p295_p2), 523264  }
   0x7   : > { %530 = vmatprep.mubr.bf16.mxu1 (!%p295_p2), %v1334_v11  ;;  %vm705_vm5 = vcmask (!%p295_p2), 64512  }
   0x8   : > { %v465_v30 = vshrl.u32 (!%p295_p2), %v464_v29, 7 }
   0xa   : > { %v466_v31 = vsub.s32 (!%p295_p2), 0, %v465_v30  ;;  %v470_v33 = vsub.s32 (!%p295_p2), 1, %v465_v30 }
   0xd   : > { %s1501_s25 = smov (!%p353_p3, %s1121_s25), 2 }
   0xe   : > { %s1280_s26 = smul.u32 12, %s1501_s25  ;;  %s1172_s27 = sshll.u32 %s1501_s25, 6 }
   0xf   : > { %s1393_s30 = scalar_lea.vmem %s1497_s5, %s1172_s27  ;;  %s1396_s8 = sshll.u32 %s1501_s25, 4 }
  0x10   : > { %s362_s11 = scalar_lea.vmem %s1493_s1, %s1280_s26  ;;  %s357_s14 = scalar_lea.vmem %s1492_s0, %s1396_s8  ;;  %v1300_v12 = vld [vmem:[%s1393_s30] sm:$0xff]   ;;  %v1301_v13 = vld [vmem:[%s1393_s30 + $0x8] sm:$0xff]   ;;  %v1302_v14 = vld [vmem:[%s1393_s30 + $0x10] sm:$0xff]  }
  0x11   : > { %v1292_v1 = vld [vmem:[%s362_s11] sm:$0xff]   ;;  %s1171_s15 = sshll.u32 %s1501_s25, 5  ;;  %v1293_v2 = vld [vmem:[%s362_s11 + $0x8] ss:$0 sps:$4 sm:$0xff]   ;;  %v1303_v15 = vld [vmem:[%s1393_s30 + $0x18] sm:$0xff]   ;;  %s367_s21 = scalar_lea.vmem %s1494_s2, %s1396_s8 }
  0x12   : > { %v391_v3 = vld [vmem:[%s357_s14] sm:$0xff]  ;;  %s372_s18 = scalar_lea.vmem %s1495_s3, %s1171_s15  ;;  %1207 = vmatpush3.bf16.msra.mxu0 %v1292_v1  ;;  %v392_v4 = vld [vmem:[%s357_s14 + $0x8] sm:$0xff]  ;;  %v414_v5 = vsel %vm412_vm1, %v1293_v2, 0  ;;  %v1306_v27 = vld [vmem:[%s1393_s30 + $0x30] sm:$0xff]   ;;  %s1133_s22 = sshll.u32 %s1501_s25, 1 }
  0x13   : > { %1208 = vmatprep.subr.bf16.mxu0 %v1332_v0  ;;  %v1294_v6 = vld [vmem:[%s372_s18 + $0x4] ss:$8 sps:$4 sm:$0xff]   ;;  %v393_v7 = vpack.c.bf16 %v392_v4, %v391_v3  ;;  %v1296_v8 = vld [vmem:[%s372_s18] ss:$8 sps:$4 sm:$0xff]   ;;  %v1297_v9 = vld [vmem:[%s372_s18 + $0x14] ss:$8 sps:$4 sm:$0xff]   ;;  %s376_s27 = scalar_lea.vmem %s1496_s4, %s1133_s22  ;;  %s1477_s10 = scalar_lea.vmem %s1499_s7, %s1396_s8 }
  0x14   : > { %498 = vmatprep.subr.bf16.mxu1 %v1294_v6  ;;  %v1299_v10 = vld [vmem:[%s372_s18 + $0x10] ss:$8 sps:$4 sm:$0xff]   ;;  %v1304_v16 = vld [vmem:[%s1393_s30 + $0x20] sm:$0xff]   ;;  %v1305_v17 = vld [vmem:[%s1393_s30 + $0x28] sm:$0xff]  }
  0x15   : > { %499 = vmatpush1.bf16.msra.mxu1 %v1296_v8  ;;  %v397_v18 = vld [vmem:[%s367_s21] sm:$0xff]  ;;  %v398_v20 = vld [vmem:[%s367_s21 + $0x8] sm:$0xff]  ;;  %v1307_v28 = vld [vmem:[%s1393_s30 + $0x38] sm:$0xff]   ;;  %s384_s30 = scalar_lea.vmem %s1498_s6, %s1501_s25 }
  0x16   : > { %1209 = vmatpush3.bf16.msra.mxu0 %v414_v5  ;;  %500 = vmatprep.subr.bf16.mxu1 %v1297_v9  ;;  %v462_v32 = vld [vmem:[%s376_s27] sm:$0x3] }
  0x17   : > { %1214 = vmatprep.subr.bf16.mxu0 %v1332_v0  ;;  %v467_v34 = vrot.slane %v462_v32, %v466_v31  ;;  %v471_v36 = vrot.slane %v462_v32, %v470_v33  ;;  %v1146_v49 = vld [vmem:[%s384_s30] ss:$0 sm:$0xff] }
  0x19   : > { %1211 = vmatmul.mubr.msk.bf16.vlgmr.msra.gmra.mrb[0].mxu0 %vm408_vm2, %v393_v7  ;;  %501 = vmatpush1.bf16.msra.mxu1 %v1299_v10 }
  0x1a   : > { %1230 = vmatprep.mubr.msk.bf16.mxu0 %vm1333_vm0, %v1332_v0  ;;  %1215 = vmatpush3.bf16.msra.mxu0 %v1300_v12 }
  0x1b   : > { %1216 = vmatprep.subr.bf16.mxu0 %v1332_v0 }
  0x1e   : > { %1217 = vmatpush3.bf16.msra.mxu0 %v1301_v13 }
  0x1f   : > { %1218 = vmatprep.subr.bf16.mxu0 %v1332_v0 }
  0x22   : > { %1219 = vmatpush3.bf16.msra.mxu0 %v1302_v14 }
  0x23   : > { %1220 = vmatprep.subr.bf16.mxu0 %v1332_v0 }
  0x26   : > { %1221 = vmatpush3.bf16.msra.mxu0 %v1303_v15 }
  0x27   : > { %1222 = vmatprep.subr.bf16.mxu0 %v1332_v0 }
  0x2a   : > { %1223 = vmatpush3.bf16.msra.mxu0 %v1304_v16 }
  0x2b   : > { %1224 = vmatprep.subr.bf16.mxu0 %v1332_v0 }
  0x2e   : > { %1225 = vmatpush3.bf16.msra.mxu0 %v1305_v17 }
  0x2f   : > { %1226 = vmatprep.subr.bf16.mxu0 %v1332_v0 }
  0x32   : > { %1227 = vmatpush3.bf16.msra.mxu0 %v1306_v27 }
  0x33   : > { %1228 = vmatprep.subr.bf16.mxu0 %v1332_v0 }
  0x36   : > { %1229 = vmatpush3.bf16.msra.mxu0 %v1307_v28 }
  0x37   : > { %1266 = vmatprep.subr.bf16.mxu0 %v1332_v0 }
  0xec   : > { %v450_v19 = vpop.f32.mrb[0].mxu0 }
  0xed   : > { %v1212_v21 = vpop.f32.mrb[1].mxu0  ;;  %v451_v23 = vadd.f32 %v450_v19, %v397_v18 }
  0xee   : > { %v453_v22 = vpop.f32.mrb[2].mxu0 }
  0xef   : > { %v454_v24 = vadd.f32 %v453_v22, %v398_v20  ;;  %v1213_v25 = vpop.f32.mrb[3].mxu0 }
  0xf1   : > { %v457_v26 = vpack.c.bf16 %v454_v24, %v451_v23 }
  0xf3   : > { %1145 = vmatmul.mubr.msk.bf16.vlgmr.msra.gmra.mrb[0].mxu1 %vm494_vm3, %v457_v26 }
 0x1c6   : > { %v532_v35 = vpop.f32.mrb[0].mxu1 }
 0x1c7   : > { %v533_v37 = vadd.f32 %v532_v35, %v467_v34  ;;  %v534_v38 = vpop.f32.mrb[1].mxu1 }
 0x1c8   : > { %v536_v39 = vpop.f32.mrb[2].mxu1  ;;  %v535_v42 = vadd.f32 %v534_v38, %v471_v36 }
 0x1c9   : > { %v537_v40 = vadd.f32 %v536_v39, %v467_v34  ;;  %v538_v41 = vpop.f32.mrb[3].mxu1  ;;  %v541_v44 = vmax.f32 %v533_v37, 0.0 }
 0x1ca   : > { %v539_v43 = vadd.f32 %v538_v41, %v471_v36 }
 0x1cb   : > { %v542_v45 = vmax.f32 %v537_v40, 0.0 }
 0x1cc   : > { %v1439_v46 = vpack.c.bf16 %v539_v43, %v535_v42 }
 0x1cd   : > { %v543_v47 = vpack.c.bf16 %v542_v45, %v541_v44 }
 0x1ce   : > { %1278 = vmatprep.subr.msk.bf16.mxu1 %vm412_vm1, %v1439_v46  ;;  %v719_v48 = vsel %vm412_vm1, %v1439_v46, 0  ;;  %v864_v40 = vrot.slane %v1439_v46, 4 }
 0x1cf   : > { %1231 = vmatmul.mubr.bf16.vlgmr.msra.gmra.mrb[4].mxu0 %v543_v47  ;;  %1235 = vmatpush3.bf16.msra.mxu1 %v719_v48 }
 0x1d0   : > { %1244 = vmatprep.subr.bf16.mxu1 %v1332_v0  ;;  %1274 = vmatprep.mubr.msk.bf16.mxu0 %vm1333_vm0, %v1332_v0  ;;  %v878_v42 = vsel %vm412_vm1, %v864_v40, 0 }
 0x2a2   : > { %v649_v50 = vpop.f32.mrb[4].mxu0 }
 0x2a3   : > { %v650_v51 = vadd.f32 %v1146_v49, %v649_v50  ;;  %v1232_v52 = vpop.f32.mrb[5].mxu0 }
 0x2a4   : > { %v652_v53 = vpop.f32.mrb[6].mxu0 }
 0x2a5   : > { %v1155_v54 = vmul.f32 -1.442695, %v650_v51  ;;  %v653_v55 = vadd.f32 %v1146_v49, %v652_v53  ;;  %v1233_v56 = vpop.f32.mrb[7].mxu0 }
 0x2a7   : > { %1308 = vpow2.f32 %v1155_v54  ;;  %v1156_v57 = vmul.f32 -1.442695, %v653_v55 }
 0x2a9   : > { %1310 = vpow2.f32 %v1156_v57 }
 0x2b1   : > { %v1309_v58 = vpop.eup %1308 }
 0x2b2   : > { %v662_v59 = vadd.f32 1.0, %v1309_v58 }
 0x2b3   : > { %v1311_v60 = vpop.eup %1310 }
 0x2b4   : > { %1312 = vrcp.f32 %v662_v59  ;;  %v663_v61 = vadd.f32 1.0, %v1311_v60 }
 0x2b6   : > { %1314 = vrcp.f32 %v663_v61 }
 0x2be   : > { %v1313_v62 = vpop.eup %1312 }
 0x2bf   : > { %v669_v63 = vsel %vm668_vm4, %v1313_v62, 0.0 }
 0x2c0   : > { %v1315_v1 = vpop.eup %1314  ;;  %670 = vadd.xlane.f32.xlu1 %v669_v63  ;;  %v681_v2 = vrot.slane %v669_v63, 4 }
 0x2c1   : > { %v679_v3 = vpack.c.bf16 %v1315_v1, %v1313_v62  ;;  %v672_v4 = vsel %vm668_vm4, %v1315_v1, 0.0 }
 0x2c2   : > { %v682_v5 = vadd.f32 %v681_v2, %v669_v63  ;;  %v836_v6 = vrot.slane %v672_v4, 4 }
 0x2c3   : > { %689 = vxpose.xlu0.c.b16.start.end [1/1] (short) (narrow) %v679_v3, 64  ;;  %v845_v18 = vrot.slane %v679_v3, 4 }
 0x2c4   : > { %v683_v7 = vrot.slane %v682_v5, 2  ;;  %673 = vadd.xlane.f32.xlu1 %v672_v4  ;;  %v837_v8 = vadd.f32 %v836_v6, %v672_v4 }
 0x2c6   : > { %v684_v9 = vadd.f32 %v683_v7, %v682_v5  ;;  %v838_v10 = vrot.slane %v837_v8, 2 }
 0x2c8   : > { %v685_v11 = vrot.slane %v684_v9, 1  ;;  %v839_v12 = vadd.f32 %v838_v10, %v837_v8 }
 0x2ca   : > { %v686_v13 = vadd.f32 %v685_v11, %v684_v9  ;;  %v840_v14 = vrot.slane %v839_v12, 1 }
 0x2cc   : > { %v687_v15 = vadd.f32 1e-06, %v686_v13  ;;  %v841_v16 = vadd.f32 %v840_v14, %v839_v12 }
 0x2ce   : > { %1316 = vrcp.f32 %v687_v15  ;;  %v842_v17 = vadd.f32 1e-06, %v841_v16 }
 0x2d0   : > { %1318 = vrcp.f32 %v842_v17  ;;  %847 = vxpose.xlu0.c.b16.start.end [1/1] (short) (narrow) %v845_v18, 64 }
 0x2d8   : > { %v1317_v19 = vpop.eup %1316 }
 0x2d9   : > { %v786_v20 = vmul.f32 %v1317_v19, %v1313_v62 }
 0x2da   : > { %v1319_v21 = vpop.eup %1318 }
 0x2db   : > { %v1454_v22 = vmul.f32 %v1319_v21, %v1315_v1  ;;  %v787_v41 = vpack.c.bf16 %v786_v20, %v786_v20 }
 0x2dd   : > { %v946_v3 = vpack.c.bf16 %v1454_v22, %v1454_v22 }
 0x329   : > { %v697_v23 = vpop.trf.xlu0 }
 0x32a   : > { %1236 = vmatprep.mubr.msk.bf16.mxu1 %vm705_vm5, %v697_v23 }
 0x32d   : > { %v698_v24 = vpop.trf.xlu0 }
 0x32e   : > { %1237 = vmatmul.mubr.msk.bf16.vlgmr.msra.gmra.mrb[4].mxu1 %vm705_vm5, %v698_v24 }
 0x331   : > { %v699_v25 = vpop.trf.xlu0 }
 0x332   : > { %1240 = vmatprep.mubr.msk.bf16.mxu1 %vm705_vm5, %v699_v25 }
 0x335   : > { %v700_v26 = vpop.trf.xlu0 }
 0x336   : > { %1241 = vmatmul.mubr.msk.bf16.gmra.mrb[8].mxu1 %vm705_vm5, %v700_v26 }
 0x337   : > { %1252 = vmatprep.mubr.msk.bf16.mxu1 %vm1333_vm0, %v1332_v0 }
 0x339   : > { %v855_v39 = vpop.trf.xlu0 }
 0x33d   : > { %v856_v43 = vpop.trf.xlu0 }
 0x341   : > { %v857_v44 = vpop.trf.xlu0 }
 0x345   : > { %v858_v45 = vpop.trf.xlu0 }
 0x34d   : > { %v671_v46 = vpop.xlane.xlu1 %670 }
 0x34e   : > { %v675_v47 = vadd.f32 1e-06, %v671_v46 }
 0x350   : > { %1320 = vrcp.f32 %v675_v47 }
 0x351   : > { %v674_v4 = vpop.xlane.xlu1 %673 }
 0x352   : > { %v676_v5 = vadd.f32 1e-06, %v674_v4 }
 0x354   : > { %1322 = vrcp.f32 %v676_v5 }
 0x35a   : > { %v1321_v48 = vpop.eup %1320 }
 0x35e   : > { %v1323_v6 = vpop.eup %1322 }
 0x401   : > { %v1238_v27 = vpop.f32.mrb[4].mxu1 }
 0x402   : > { %v755_v28 = vpop.f32.mrb[5].mxu1 }
 0x403   : > { %v1239_v29 = vpop.f32.mrb[6].mxu1 }
 0x404   : > { %v789_v30 = vpack.c.bf16 %v1239_v29, %v1238_v27  ;;  %v758_v31 = vpop.f32.mrb[7].mxu1 }
 0x405   : > { %v788_v32 = vpack.c.bf16 %v758_v31, %v755_v28 }
 0x407   : > { %1245 = vmatpush3.bf16.msra.mxu1 %v788_v32 }
 0x408   : > { %1246 = vmatprep.subr.bf16.mxu1 %v1332_v0 }
 0x409   : > { %v1242_v33 = vpop.f32.mrb[8].mxu1 }
 0x40a   : > { %v771_v34 = vpop.f32.mrb[9].mxu1 }
 0x40b   : > { %v1243_v35 = vpop.f32.mrb[10].mxu1  ;;  %1247 = vmatpush3.bf16.msra.mxu1 %v789_v30 }
 0x40c   : > { %v791_v36 = vpack.c.bf16 %v1243_v35, %v1242_v33  ;;  %v774_v37 = vpop.f32.mrb[11].mxu1  ;;  %1248 = vmatprep.subr.bf16.mxu1 %v1332_v0 }
 0x40d   : > { %v790_v38 = vpack.c.bf16 %v774_v37, %v771_v34 }
 0x40f   : > { %1249 = vmatpush3.bf16.msra.mxu1 %v790_v38 }
 0x410   : > { %1250 = vmatprep.subr.bf16.mxu1 %v1332_v0 }
 0x413   : > { %1251 = vmatpush3.bf16.msra.mxu1 %v791_v36 }
 0x414   : > { %1279 = vmatprep.subr.msk.bf16.mxu1 %vm412_vm1, %v864_v40 }
 0x416   : > { %1253 = vmatmul.mubr.msk.bf16.vlgmr.msra.gmra.mrb[12].mxu1 %vm668_vm4, %v787_v41 }
 0x417   : > { %1257 = vmatpush3.bf16.msra.mxu1 %v878_v42  ;;  %1258 = vmatprep.mubr.msk.bf16.mxu1 %vm705_vm5, %v855_v39 }
 0x41e   : > { %1259 = vmatmul.mubr.msk.bf16.vlgmr.msra.gmra.mrb[16].mxu1 %vm705_vm5, %v856_v43 }
 0x41f   : > { %1262 = vmatprep.mubr.msk.bf16.mxu1 %vm705_vm5, %v857_v44 }
 0x426   : > { %1263 = vmatmul.mubr.msk.bf16.gmra.mrb[20].mxu1 %vm705_vm5, %v858_v45 }
 0x4e9   : > { %v829_v49 = vpop.f32.mrb[12].mxu1 }
 0x4ea   : > { %v835_v50 = vmul.f32 %v1321_v48, %v829_v49  ;;  %v1254_v51 = vpop.f32.mrb[13].mxu1 }
 0x4eb   : > { %v832_v52 = vpop.f32.mrb[14].mxu1 }
 0x4ec   : > { %995 = vst.msk [vmem:[%s1477_s10] sm:$0xff] %vm494_vm3, %v835_v50  ;;  %v1255_v53 = vpop.f32.mrb[15].mxu1 }
 0x4f1   : > { %v1260_v54 = vpop.f32.mrb[16].mxu1 }
 0x4f2   : > { %v914_v55 = vpop.f32.mrb[17].mxu1 }
 0x4f3   : > { %v1261_v56 = vpop.f32.mrb[18].mxu1 }
 0x4f4   : > { %v948_v57 = vpack.c.bf16 %v1261_v56, %v1260_v54  ;;  %v917_v58 = vpop.f32.mrb[19].mxu1 }
 0x4f5   : > { %v947_v59 = vpack.c.bf16 %v917_v58, %v914_v55 }
 0x4f7   : > { %1267 = vmatpush3.bf16.msra.mxu0 %v947_v59 }
 0x4f8   : > { %1268 = vmatprep.subr.bf16.mxu0 %v1332_v0 }
 0x4f9   : > { %v1264_v60 = vpop.f32.mrb[20].mxu1 }
 0x4fa   : > { %v930_v61 = vpop.f32.mrb[21].mxu1 }
 0x4fb   : > { %v1265_v62 = vpop.f32.mrb[22].mxu1  ;;  %1269 = vmatpush3.bf16.msra.mxu0 %v948_v57 }
 0x4fc   : > { %v950_v63 = vpack.c.bf16 %v1265_v62, %v1264_v60  ;;  %v933_v1 = vpop.f32.mrb[23].mxu1  ;;  %1270 = vmatprep.subr.bf16.mxu0 %v1332_v0 }
 0x4fd   : > { %v949_v2 = vpack.c.bf16 %v933_v1, %v930_v61 }
 0x4ff   : > { %1271 = vmatpush3.bf16.msra.mxu0 %v949_v2 }
 0x500   : > { %1272 = vmatprep.subr.bf16.mxu0 %v1332_v0 }
 0x503   : > { %1273 = vmatpush3.bf16.msra.mxu0 %v950_v63 }
 0x506   : > { %1275 = vmatmul.mubr.msk.bf16.vlgmr.msra.gmra.mrb[8].mxu0 %vm668_vm4, %v946_v3 }
 0x5d9   : > { %v988_v7 = vpop.f32.mrb[8].mxu0 }
 0x5da   : > { %v994_v8 = vmul.f32 %v1323_v6, %v988_v7  ;;  %v1276_v9 = vpop.f32.mrb[9].mxu0 }
 0x5db   : > { %v991_v10 = vpop.f32.mrb[10].mxu0 }
 0x5dc   : > { %996 = vst.msk [vmem:[%s1477_s10 + $0x8] sm:$0xff] %vm494_vm3, %v994_v8  ;;  %v1277_v11 = vpop.f32.mrb[11].mxu0 }
 0x5dd PF: > { %s17_s24 = sadd.s32 1, %s1330_s24  }
 0x5de   : > { %p14_p4 = scmp.ge.s32.totalorder %s17_s24, 5  }
 0x5e0   :  { %16 = sbr.rel (!%p14_p4) target bundleno = 1 (0x1), region = 96 }

</bundles_post_ra>
